<compile_context>
chip_gen: v7x
topology: tpu7x:2x2x1
jax: 0.10.0
libtpu: 0.0.40
codegen_flags: <defaults>
</compile_context>

<pallas_src>
from functools import partial

import jax
import jax.numpy as jnp
from jax.experimental import pallas as pl
from jax.experimental.pallas import tpu as pltpu

ATTRIBUTE_DIMS = {
    "country_of_origin": 13,
    "native_speaker": 2,
    "accent": 15,
    "digit": 10,
    "age": 5,
    "gender": 2,
}
IMAGE_SHAPE = (128, 128)
LATENT_DIM = 512
D = 64  # base width


# ---------------------------------------------------------------------------
# Pallas kernels
# ---------------------------------------------------------------------------
def _gemm_bias_act_kernel(a_ref, b_ref, bias_ref, o_ref, acc_ref, *, act):
    """Tiled GEMM (bf16 x bf16 -> f32 acc) with fused bias + LeakyReLU(0.2)."""
    @pl.when(pl.program_id(2) == 0)
    def _():
        acc_ref[...] = jnp.zeros_like(acc_ref)

    acc_ref[...] += jnp.dot(
        a_ref[...], b_ref[...], preferred_element_type=jnp.float32
    )

    @pl.when(pl.program_id(2) == pl.num_programs(2) - 1)
    def _():
        y = acc_ref[...] + bias_ref[...]
        if act:  # static python bool -> specialized kernel
            y = jnp.where(y > 0, y, 0.2 * y)
        o_ref[...] = y.astype(o_ref.dtype)


def _tanh_kernel(x_ref, o_ref):
    o_ref[...] = jnp.tanh(x_ref[...]).astype(o_ref.dtype)


# ---------------------------------------------------------------------------
# Helpers
# ---------------------------------------------------------------------------
def _round_up(x, m):
    return (x + m - 1) // m * m


def _pick_tk(kp, max_tk=2048):
    """Largest K tile <= max_tk that exactly divides padded K (mult. of 128)."""
    if kp <= max_tk:
        return kp
    best = 128
    for t in range(128, max_tk + 1, 128):
        if kp % t == 0:
            best = t
    return best


def _prep_gemm(w2d, bias):
    """Pre-pad + pre-cast one (K, N) weight and bias to GEMM layout (once)."""
    k, n = w2d.shape
    kp, np_ = _round_up(k, 128), _round_up(n, 128)
    wp = jnp.zeros((kp, np_), jnp.bfloat16).at[:k, :n].set(
        w2d.astype(jnp.bfloat16)
    )
    bp = jnp.zeros((1, np_), jnp.float32).at[0, :n].set(bias)
    return {"w": wp, "b": bp, "k": k, "n": n}


# ---------------------------------------------------------------------------
# Pallas wrappers
# ---------------------------------------------------------------------------
def gemm_bias_act(a, layer, act, out_dtype=jnp.float32):
    """(M,K) @ pre-padded bf16 weight + bias, optional LeakyReLU(0.2)."""
    w, bias, n_out = layer["w"], layer["b"], layer["n"]
    m, k = a.shape
    kp, np_ = w.shape
    assert k == layer["k"]

    # Right-size the M tile to the real M (mult of 16 for bf16 sublane tiling).
    tm = min(128, _round_up(m, 16))
    mp = _round_up(m, tm)

    # N tile: lane-dense, capped at 512; split tiny-M layers into >=2 j-blocks
    # so both TensorCores on v7x get parallel work.
    tn = np_ if np_ <= 512 else 512
    if m <= tm and (np_ // tn) < 2 and np_ >= 256 and (np_ // 2) % 128 == 0:
        tn = np_ // 2

    tk = _pick_tk(kp)

    a = a.astype(jnp.bfloat16)
    if (mp, kp) != (m, k):
        a = jnp.pad(a, ((0, mp - m), (0, kp - k)))

    out = pl.pallas_call(
        partial(_gemm_bias_act_kernel, act=act),
        out_shape=jax.ShapeDtypeStruct((mp, np_), out_dtype),
        grid_spec=pltpu.PrefetchScalarGridSpec(
            num_scalar_prefetch=0,
            grid=(mp // tm, np_ // tn, kp // tk),
            in_specs=[
                pl.BlockSpec((tm, tk), lambda i, j, kk: (i, kk)),
                pl.BlockSpec((tk, tn), lambda i, j, kk: (kk, j)),
                pl.BlockSpec((1, tn), lambda i, j, kk: (0, j)),
            ],
            out_specs=pl.BlockSpec((tm, tn), lambda i, j, kk: (i, j)),
            scratch_shapes=[pltpu.VMEM((tm, tn), jnp.float32)],
        ),
        compiler_params=pltpu.CompilerParams(
            dimension_semantics=("parallel", "parallel", "arbitrary"),
            vmem_limit_bytes=32 * 1024 * 1024,
        ),
    )(a, w, bias)
    return out[:m, :n_out]


def pallas_tanh(x2d, out_dtype=jnp.bfloat16):
    """Elementwise tanh on a small lane-dense 2D array, single VMEM block."""
    r, c = x2d.shape
    rp = _round_up(r, 8)
    if rp != r:
        x2d = jnp.pad(x2d, ((0, rp - r), (0, 0)))
    out = pl.pallas_call(
        _tanh_kernel,
        out_shape=jax.ShapeDtypeStruct((rp, c), out_dtype),
        grid=(1,),
        in_specs=[pl.BlockSpec((rp, c), lambda i: (0, 0))],
        out_specs=pl.BlockSpec((rp, c), lambda i: (0, 0)),
    )(x2d)
    return out[:r]


# ---------------------------------------------------------------------------
# Conv via im2col (bf16) + Pallas GEMM
# ---------------------------------------------------------------------------
def _im2col(x_nhwc, kh, kw, stride, pad):
    n, h, w, c = x_nhwc.shape
    xp = jnp.pad(x_nhwc, ((0, 0), (pad, pad), (pad, pad), (0, 0)))
    oh = (h + 2 * pad - kh) // stride + 1
    ow = (w + 2 * pad - kw) // stride + 1
    cols = []
    for i in range(kh):
        for j in range(kw):
            cols.append(
                xp[:, i : i + stride * oh : stride, j : j + stride * ow : stride, :]
            )
    patches = jnp.stack(cols, axis=3)            # (N, OH, OW, KH*KW, C)
    return patches.reshape(n * oh * ow, kh * kw * c), oh, ow


def conv2d_k5s2p1(x_nhwc, layer, act, out_dtype=jnp.bfloat16):
    """5x5 conv, stride 2, pad 1 (NHWC bf16), weight pre-packed as GEMM."""
    # TODO(synk): fold the 5x5 taps into the GEMM kernel (sum of shifted
    # matmuls over a kh*kw grid axis) to avoid materializing patches at all.
    patches, oh, ow = _im2col(x_nhwc, 5, 5, 2, 1)
    y = gemm_bias_act(patches, layer, act, out_dtype)
    return y.reshape(x_nhwc.shape[0], oh, ow, layer["n"])


# ---------------------------------------------------------------------------
# Parameters (deterministic synthetic init; GEMM weights pre-padded/cast once)
# ---------------------------------------------------------------------------
def init_params(key):
    keys = jax.random.split(key, 32)
    ki = iter(range(32))
    params = {"emb": {}}

    # Embedding tables (v, 256), like nn.Embedding default N(0,1)
    for k in sorted(ATTRIBUTE_DIMS.keys()):
        v = ATTRIBUTE_DIMS[k]
        params["emb"][k] = jax.random.normal(keys[next(ki)], (v, 256), jnp.float32)

    def conv_layer(key_, cin, cout, li):
        scale = 1.0 / jnp.sqrt(5.0 * 5.0 * cin)
        w = scale * jax.random.normal(key_, (5, 5, cin, cout), jnp.float32)
        b = jnp.full((cout,), 0.01 * li, jnp.float32)
        return _prep_gemm(w.reshape(5 * 5 * cin, cout), b)

    def lin_layer(key_, cin, cout):
        scale = 1.0 / jnp.sqrt(float(cin))
        w = scale * jax.random.normal(key_, (cin, cout), jnp.float32)
        return _prep_gemm(w, jnp.zeros((cout,), jnp.float32))

    # dx: 7 -> 64 -> 128 -> 256 -> 512 -> 1024 -> 512
    chans = [len(ATTRIBUTE_DIMS) + 1, D, 2 * D, 4 * D, 8 * D, 16 * D, LATENT_DIM]
    params["dx"] = [
        conv_layer(keys[next(ki)], chans[i], chans[i + 1], i) for i in range(6)
    ]

    # dz: two 1x1 convs 512 -> 512
    params["dz0"] = lin_layer(keys[next(ki)], LATENT_DIM, LATENT_DIM)
    params["dz1"] = lin_layer(keys[next(ki)], LATENT_DIM, LATENT_DIM)

    # dxz: 1024 -> 1024 -> 1024 -> 1 (all 1x1 convs)
    params["dxz0"] = lin_layer(keys[next(ki)], 2 * LATENT_DIM, 1024)
    params["dxz1"] = lin_layer(keys[next(ki)], 1024, 1024)
    params["dxz2"] = lin_layer(keys[next(ki)], 1024, 1)
    return params


# ---------------------------------------------------------------------------
# Forward pass
# ---------------------------------------------------------------------------
def discriminator_forward(params, X, z, a):
    B = X.shape[0]
    X = X.reshape(B, 1, *IMAGE_SHAPE).astype(jnp.bfloat16)   # NCHW, like torch

    # Embeddings: lookup -> tanh (Pallas, before upsample: tanh commutes with
    # nearest-neighbour replication) -> (1,16,16) -> upsample x8
    keys = sorted(ATTRIBUTE_DIMS.keys())
    embs = []
    for k in keys:
        idx = jnp.argmax(a[k], axis=1)                       # (B,)
        embs.append(params["emb"][k][idx])                   # (B, 256) f32
    e = jnp.stack(embs, axis=1).reshape(B * len(keys), 256)  # (B*6, 256)
    e = pallas_tanh(e, jnp.bfloat16)                         # (B*6, 256) bf16
    e = e.reshape(B, len(keys), 16, 16)
    e = jnp.repeat(jnp.repeat(e, 8, axis=2), 8, axis=3)      # (B,6,128,128)

    x = jnp.concatenate([X, e], axis=1)                      # (B,7,128,128) NCHW
    x = jnp.transpose(x, (0, 2, 3, 1))                       # -> NHWC bf16

    # dx: 6 strided 5x5 convs, LeakyReLU(0.2) after all but the last
    acts = [True, True, True, True, True, False]
    for li in range(6):
        x = conv2d_k5s2p1(x, params["dx"][li], acts[li], out_dtype=jnp.bfloat16)
    dx = x.reshape(B, LATENT_DIM)                            # final spatial 1x1

    # dz: two 1x1 convs on (B, 512, 1, 1) == dense layers
    zz = z.reshape(B, LATENT_DIM)
    zz = gemm_bias_act(zz, params["dz0"], True, jnp.bfloat16)
    zz = gemm_bias_act(zz, params["dz1"], True, jnp.bfloat16)

    # dxz: concat then three 1x1 convs
    h = jnp.concatenate([dx, zz], axis=1)                    # (B, 1024) bf16
    h = gemm_bias_act(h, params["dxz0"], True, jnp.bfloat16)
    h = gemm_bias_act(h, params["dxz1"], True, jnp.bfloat16)
    out = gemm_bias_act(h, params["dxz2"], False, jnp.float32)
    return out.reshape(B, 1)


# ---------------------------------------------------------------------------
if __name__ == "__main__":
    B = 2
    key = jax.random.PRNGKey(0)
    kx, kz, ka, kp = jax.random.split(key, 4)

    X = jax.random.normal(kx, (B, *IMAGE_SHAPE), jnp.float32)   # (2, 128, 128)
    z = jax.random.normal(kz, (B, LATENT_DIM), jnp.float32)     # (2, 512)

    # One-hot attribute dicts (argmax is taken inside forward, as in torch)
    a = {}
    akeys = jax.random.split(ka, len(ATTRIBUTE_DIMS))
    for i, k in enumerate(sorted(ATTRIBUTE_DIMS.keys())):
        v = ATTRIBUTE_DIMS[k]
        idx = jax.random.randint(akeys[i], (B,), 0, v)
        a[k] = jax.nn.one_hot(idx, v, dtype=jnp.float32)

    params = init_params(kp)

    out = discriminator_forward(params, X, z, a)
    out = jax.block_until_ready(out)
    assert out.shape == (B, 1), out.shape
    assert jnp.all(jnp.isfinite(out))
    print("KERNEL_OK")
</pallas_src>

<mosaic_0001>
module attributes {stable_mosaic.version = 11 : i64} {
  func.func @_tanh_kernel(%arg0: i32, %arg1: memref<16x256xf32, #tpu.memory_space<vmem>>, %arg2: memref<16x256xbf16, #tpu.memory_space<vmem>>) attributes {dimension_semantics = [#tpu.dimension_semantics<arbitrary>], iteration_bounds = array<i64: 1>, scalar_prefetch = 0 : i64, scratch_operands = 0 : i64, tpu.core_type = #tpu.core_type<tc>, window_params = [{pipeline_mode = #tpu.pipeline_mode<synchronous>, transform_indices = @transform_0, window_bounds = array<i64: 16, 256>}, {pipeline_mode = #tpu.pipeline_mode<synchronous>, transform_indices = @transform_1, window_bounds = array<i64: 16, 256>}]} {
    %c0 = arith.constant 0 : index
    %c0_0 = arith.constant 0 : index
    %0 = vector.load %arg1[%c0, %c0_0] : memref<16x256xf32, #tpu.memory_space<vmem>>, vector<16x256xf32>
    %1 = math.tanh %0 : vector<16x256xf32>
    %2 = arith.truncf %1 : vector<16x256xf32> to vector<16x256xbf16>
    %c0_1 = arith.constant 0 : index
    %c0_2 = arith.constant 0 : index
    %3 = vector.load %arg2[%c0_1, %c0_2] : memref<16x256xbf16, #tpu.memory_space<vmem>>, vector<16x256xbf16>
    tpu.vector_store %arg2[%c0_1, %c0_2], %2 {strides = array<i32>} : memref<16x256xbf16, #tpu.memory_space<vmem>>, vector<16x256xbf16>,
    return
  }
  func.func @transform_0(%arg0: i32) -> (i32, i32) {
    %c0_i32 = arith.constant 0 : i32
    %c0_i32_0 = arith.constant 0 : i32
    %c0_i32_1 = arith.constant 0 : i32
    return %c0_i32, %c0_i32_0 : i32, i32
  }
  func.func @transform_1(%arg0: i32) -> (i32, i32) {
    %c0_i32 = arith.constant 0 : i32
    %c0_i32_0 = arith.constant 0 : i32
    %c0_i32_1 = arith.constant 0 : i32
    return %c0_i32, %c0_i32_0 : i32, i32
  }
}

</mosaic_0001>

<bundles_post_ra>
// kernel: tpu_custom_call.1
= control target key start
LH: loop header
LB: loop body
LE: loop exit
PB: predicated region body
PF: predicated region fallthrough
CT: control target
= control target key end

     0   :  { %6 = vsyncpa [#allocation3], 0  ;;  %s168_s0 = inlined_call_operand.hbm [shape: f32[16,256], index: 0, kind: input, shape index: {}]   ;;  %s169_s1 = inlined_call_operand.hbm [shape: bf16[16,256], index: 1, kind: output, shape index: {}]  }
   0x1   :  { %7 = vsyncpa [#allocation4], 0  ;;  %s128_s6 = smov [#allocation2]   ;;  %s80_s10 = scalar_lea.hbm %s168_s0, 512 }
   0x2   :  { %s13_s7 = sshll.u32 %s128_s6, 4  ;;  %p81_p0 = scmp.ne.s32.totalorder %s168_s0, %s80_s10  ;;  %s14_s7 = int_to_ptr.vmem [resolvable:$true] %s13_s7 }
   0x3   :  { %p84_p1 = scmp.lt.u32.totalorder %s80_s10, %s168_s0 }
   0x5   :  { %p86_p2 = pnand %p84_p1, %p81_p0 }
   0x7   :  { %89 = shalt.err (!%p86_p2)
}
   0x8   :  { %s90_s15 = scalar_lea.vmem %s14_s7, 512  ;;  %p95_p4 = scmp.lt.s32.totalorder %s14_s7, %s14_s7 }
   0x9   :  { %p91_p3 = scmp.ne.s32.totalorder %s14_s7, %s90_s15  ;;  %p96_p5 = scmp.lt.s32.totalorder %s90_s15, %s90_s15 }
   0xb   :  { %p97_p6 = por %p96_p5, %p95_p4 }
   0xd   :  { %p98_p7 = pnand %p97_p6, %p91_p3 }
   0xf   :  { %101 = shalt.err (!%p98_p7)
}
  0x10   :  { %s129_s16 = smov 256   ;;  %s130_s17 = smov 16  }
  0x11   :  { %19 = dma.hbm_to_vmem [thread:$0]  %s168_s0, 512, %s14_s7, [#allocation3], %s129_s16, %s129_s16, %s130_s17  }
  0x12   :  { %124 = dma.done.wait [#allocation3], 512  }
  0x13   :  { %125 = vsyncadd [#allocation3], 4294966784  ;;  %v23_v0 = vld [vmem:[#allocation2] sm:$0xff]  ;;  %v24_v1 = vld [vmem:[#allocation2 + $0x8] sm:$0xff]  ;;  %s131_s20 = smov [#allocation5]  }
  0x14   :  { %v25_v2 = vld [vmem:[#allocation2 + $0x10] sm:$0xff]  ;;  %72 = vtanh.f32 %v23_v0  ;;  %v26_v3 = vld [vmem:[#allocation2 + $0x18] sm:$0xff]  ;;  %s50_s21 = sshll.u32 %s131_s20, 4  ;;  %s51_s21 = int_to_ptr.vmem [resolvable:$true] %s50_s21 }
  0x15   :  { %74 = vtanh.f32 %v24_v1  ;;  %s102_s0 = scalar_lea.vmem %s51_s21, 256  ;;  %p107_p9 = scmp.lt.s32.totalorder %s51_s21, %s51_s21 }
  0x16   :  { %76 = vtanh.f32 %v25_v2  ;;  %p103_p8 = scmp.ne.s32.totalorder %s51_s21, %s102_s0  ;;  %p108_p10 = scmp.lt.s32.totalorder %s102_s0, %s102_s0 }
  0x17   :  { %78 = vtanh.f32 %v26_v3 }
  0x18   :  { %p109_p11 = por %p108_p10, %p107_p9 }
  0x1a   :  { %p110_p12 = pnand %p109_p11, %p103_p8 }
  0x1e   :  { %v73_v4 = vpop.eup %72 }
  0x1f   :  { %v75_v5 = vpop.eup %74 }
  0x20   :  { %v77_v6 = vpop.eup %76  ;;  %v64_v7 = vpack.c.bf16 %v75_v5, %v73_v4 }
  0x21   :  { %v79_v8 = vpop.eup %78 }
  0x22   :  { %43 = vst [vmem:[#allocation5] sm:$0xff] %v64_v7  ;;  %v65_v9 = vpack.c.bf16 %v79_v8, %v77_v6 }
  0x24   :  { %44 = vst [vmem:[#allocation5 + $0x8] sm:$0xff] %v65_v9 }
  0x25   :  { %113 = shalt.err (!%p110_p12)
}
  0x26   :  { %s114_s24 = scalar_lea.hbm %s169_s1, 256 }
  0x27   :  { %p115_p13 = scmp.ne.s32.totalorder %s169_s1, %s114_s24  ;;  %p118_p0 = scmp.lt.u32.totalorder %s114_s24, %s169_s1 }
  0x29   :  { %p120_p1 = pnand %p118_p0, %p115_p13 }
  0x2b   :  { %123 = shalt.err (!%p120_p1)
}
  0x2c   :  { %s132_s29 = smov 128   ;;  %s133_s30 = smov 8  }
  0x2d   :  { %56 = dma.vmem_to_hbm [thread:$0]  %s51_s21, 256, %s169_s1, [#allocation4], %s132_s29, %s132_s29, %s133_s30  }
  0x2e   :  { %126 = dma.done.wait [#allocation4], 256  }
  0x2f   :  { %127 = vsyncadd [#allocation4], 4294967040 }
  0x30   :  { %60 = vsyncpa [#allocation3], 1 }
  0x31   :  { %61 = vsyncpa [#allocation4], 1 }

</bundles_post_ra>
